<compile_context>
chip_gen: v5e
topology: v5e:2x2
jax: 0.10.0
libtpu: 0.0.40
codegen_flags: <defaults>
</compile_context>

<pallas_src>
import functools

import jax
import jax.numpy as jnp
from jax.experimental import pallas as pl
from jax.experimental.pallas import tpu as pltpu


def _ffn_kernel(x_ref, xprev_ref, state_ref, gamma_ref, beta_ref, xkm_ref,
                wk_ref, wv_ref, out_ref, xk_ref, acc_ref):
    t = pl.program_id(0)           # T-tile index (independent -> "parallel")
    ki = pl.program_id(1)          # I-block index (inner reduction)
    n_ki = pl.num_programs(1)
    tq = x_ref.shape[0]

    # Per-T-tile prologue (ki == 0): LayerNorm + token shift + mix, stashed in
    # bf16 for reuse across all I blocks of this tile.
    @pl.when(ki == 0)
    def _():
        gamma = gamma_ref[...]
        beta = beta_ref[...]

        x = x_ref[...].astype(jnp.float32)
        mean = jnp.mean(x, axis=-1, keepdims=True)
        xc = x - mean
        var = jnp.mean(xc * xc, axis=-1, keepdims=True)
        x_ln = xc * jax.lax.rsqrt(var + 1e-5) * gamma + beta

        # Token shift: past[0] = LN(previous tile's last raw row) -- or the
        # incoming `state` for the first tile -- past[r>=1] = x_ln[r-1] via an
        # XLU sublane roll.  No sequential carry across tiles.
        prev = xprev_ref[tq - 1:tq, :].astype(jnp.float32)       # (1, H)
        pmean = jnp.mean(prev, axis=-1, keepdims=True)
        pc = prev - pmean
        pvar = jnp.mean(pc * pc, axis=-1, keepdims=True)
        prev_ln = pc * jax.lax.rsqrt(pvar + 1e-5) * gamma + beta
        first_past = jnp.where(t == 0, state_ref[...], prev_ln)

        rolled = pltpu.roll(x_ln, shift=1, axis=0)
        row = jax.lax.broadcasted_iota(jnp.int32, x_ln.shape, 0)
        past = jnp.where(row == 0, first_past, rolled)

        xk = x_ln + (past - x_ln) * xkm_ref[...]
        xk_ref[...] = xk.astype(jnp.bfloat16)

    # key matmul for this I block: (tq,H) @ (H,ti) -> (tq,ti), f32 accumulate.
    k = jnp.dot(xk_ref[...], wk_ref[...], preferred_element_type=jnp.float32)
    k = jnp.maximum(k, 0.0)
    k = k * k                                                    # relu^2, f32
    # value matmul: (tq,ti) @ (ti,H) -> (tq,H), f32 accumulate.
    v = jnp.dot(k.astype(jnp.bfloat16), wv_ref[...],
                preferred_element_type=jnp.float32)

    @pl.when(ki == 0)
    def _():
        acc_ref[...] = v           # init from first block (no zero + +=)

    @pl.when(ki > 0)
    def _():
        acc_ref[...] += v

    # Flush this T tile on the last I block: residual add with pre-LN x.
    @pl.when(ki == n_ki - 1)
    def _():
        out_ref[...] = (acc_ref[...] +
                        x_ref[...].astype(jnp.float32)).astype(out_ref.dtype)


def _choose_tile(total, preferred, align):
    """Largest divisor of `total` that is a multiple of `align` and <= preferred
    (falls back to 8-alignment, then to the full extent)."""
    if total <= preferred:
        return total
    for a in (align, 8):
        t = (min(preferred, total) // a) * a
        while t >= a:
            if total % t == 0:
                return t
            t -= a
    return total


def _tpu_vmem_capacity_bytes():
    try:
        return int(pltpu.get_tpu_info().vmem_capacity_bytes)
    except Exception:
        return 64 * 1024 * 1024        # conservative: v7x per-TC VMEM


def _select_tiles(T, H, I, x_bytes, out_bytes, vmem_budget):
    # tq: matmul M dim.  ~512 rows puts arithmetic intensity past the HBM/MXU
    # crossover on every current generation (~240 / ~650 / ~310 FLOP per
    # weight byte on v5e / v6e / v7x) while staying 128-aligned for the MXU.
    tq = _choose_tile(T, 512, 128)
    fixed = (2 * tq * H * x_bytes        # x block (double-buffered)
             + 2 * tq * H * x_bytes      # x_prev block (double-buffered)
             + 2 * tq * H * out_bytes    # out block (double-buffered)
             + tq * H * 2                # bf16 xk stash (scratch)
             + tq * H * 4                # f32 accumulator (scratch)
             + 16 * H * 4)               # small (1,H) params
    weight_budget = max(vmem_budget - fixed, 0)
    # Two bf16 weight blocks ((H,ti) + (ti,H)), each double-buffered.
    ti_cap = weight_budget // (8 * H)
    ti_cap = max((ti_cap // 128) * 128, 128)
    ti = _choose_tile(I, min(ti_cap, 2048), 128)
    return tq, ti


def prepare_ffn_weights(key_w, value_w):
    """One-time (model init) weight preparation: bf16 + MXU-friendly layouts.
    key.weight  (I, H) torch layout -> (H, I)  so key matmul is (M,K)x(K,N)
    value.weight (H, I) torch layout -> (I, H) so value matmul is (M,K)x(K,N)."""
    wk_t = jnp.asarray(key_w).T.astype(jnp.bfloat16)       # (H, I)
    wv_t = jnp.asarray(value_w).T.astype(jnp.bfloat16)     # (I, H)
    return wk_t, wv_t


def rwkv7_feed_forward(x, state, ln_w, ln_b, x_k, wk_t, wv_t, *,
                       tq=None, ti=None):
    """x: (1, T, H) native dtype; state: (1, 1, H); ln_w/ln_b: (H,);
    x_k: (1, 1, H); wk_t: (H, I) bf16; wv_t: (I, H) bf16 (see prepare_ffn_weights)."""
    B, T, H = x.shape
    assert B == 1
    I = wk_t.shape[1]
    assert wk_t.shape == (H, I) and wv_t.shape == (I, H)
    assert H % 128 == 0, "hidden_size must be a multiple of 128 (lane aligned)"

    # Keep x in its native dtype (no wrapper up-cast / extra HBM pass); tiny
    # (1,H) params are cast to f32 (negligible).
    x2 = x[0]                                         # (T, H)
    state2 = state.reshape(1, H).astype(jnp.float32)
    gamma = ln_w.reshape(1, H).astype(jnp.float32)
    beta = ln_b.reshape(1, H).astype(jnp.float32)
    xkm = x_k.reshape(1, H).astype(jnp.float32)

    x_bytes = jnp.dtype(x.dtype).itemsize
    vmem_budget = (_tpu_vmem_capacity_bytes() * 3) // 4   # leave compiler headroom
    auto_tq, auto_ti = _select_tiles(T, H, I, x_bytes, x_bytes, vmem_budget)
    if tq is None:
        tq = auto_tq
    if ti is None:
        ti = auto_ti
    assert T % tq == 0 and I % ti == 0

    n_t, n_i = T // tq, I // ti

    out = pl.pallas_call(
        _ffn_kernel,
        out_shape=jax.ShapeDtypeStruct((T, H), x.dtype),
        grid_spec=pltpu.PrefetchScalarGridSpec(
            num_scalar_prefetch=0,
            grid=(n_t, n_i),
            in_specs=[
                pl.BlockSpec((tq, H), lambda t, i: (t, 0)),        # x tile
                # previous T tile (its last raw row feeds the token shift);
                # clamped to tile 0 and substituted by `state` inside kernel.
                pl.BlockSpec((tq, H),
                             lambda t, i: (jnp.maximum(t - 1, 0), 0)),
                pl.BlockSpec((1, H), lambda t, i: (0, 0)),         # state
                pl.BlockSpec((1, H), lambda t, i: (0, 0)),         # ln gamma
                pl.BlockSpec((1, H), lambda t, i: (0, 0)),         # ln beta
                pl.BlockSpec((1, H), lambda t, i: (0, 0)),         # x_k mix
                pl.BlockSpec((H, ti), lambda t, i: (0, i)),        # Wk^T block
                pl.BlockSpec((ti, H), lambda t, i: (i, 0)),        # Wv^T block
            ],
            out_specs=pl.BlockSpec((tq, H), lambda t, i: (t, 0)),
            scratch_shapes=[
                pltpu.VMEM((tq, H), jnp.bfloat16),   # stashed mixed input xk
                pltpu.VMEM((tq, H), jnp.float32),    # value accumulator
            ]),
        compiler_params=pltpu.CompilerParams(
            dimension_semantics=("parallel", "arbitrary"),
            vmem_limit_bytes=int(vmem_budget)),
    )(x2, x2, state2, gamma, beta, xkm, wk_t, wv_t)

    # state_out = LN(x)[:, -1:, :] -- a single (1, H) row.  Done in plain jnp
    # so the kernel's T axis has no sequential carry and can stay
    # megacore-parallel; HBM cost is one H-wide row.
    last = x[:, -1:, :].astype(jnp.float32)
    lm = jnp.mean(last, axis=-1, keepdims=True)
    lc = last - lm
    lv = jnp.mean(lc * lc, axis=-1, keepdims=True)
    state_out = (lc * jax.lax.rsqrt(lv + 1e-5) * ln_w + ln_b).astype(x.dtype)

    return out.reshape(1, T, H), state_out


def _reference(x, state, ln_w, ln_b, x_k, key_w, value_w):
    eps = 1e-5
    mean = x.mean(-1, keepdims=True)
    var = ((x - mean) ** 2).mean(-1, keepdims=True)
    x_ln = (x - mean) * jax.lax.rsqrt(var + eps) * ln_w + ln_b
    state_out = x_ln[:, -1:, :]
    past = jnp.concatenate([state.reshape(1, 1, -1), x_ln[:, :-1, :]], axis=1)
    sx = past - x_ln
    xk = x_ln + sx * x_k
    k = jnp.maximum(xk @ key_w.T, 0.0) ** 2
    v = k @ value_w.T
    return v + x, state_out


if __name__ == "__main__":
    B, T, H, I = 1, 16, 128, 256   # batch, seq, hidden_size, intermediate_size

    key = jax.random.PRNGKey(0)
    ks = jax.random.split(key, 7)
    x = jax.random.normal(ks[0], (B, T, H), jnp.float32)
    state = jax.random.normal(ks[1], (B, 1, H), jnp.float32)
    ln_w = 1.0 + 0.1 * jax.random.normal(ks[2], (H,), jnp.float32)
    ln_b = 0.1 * jax.random.normal(ks[3], (H,), jnp.float32)
    x_k = jax.random.uniform(ks[4], (1, 1, H), jnp.float32)
    key_w = 0.1 * jax.random.normal(ks[5], (I, H), jnp.float32)    # key.weight
    value_w = 0.1 * jax.random.normal(ks[6], (H, I), jnp.float32)  # value.weight

    # one-time weight prep (bf16 + transposed layouts), outside the per-call path
    wk_t, wv_t = prepare_ffn_weights(key_w, value_w)
    jax.block_until_ready((wk_t, wv_t))

    ref_out, ref_state_out = _reference(x, state, ln_w, ln_b, x_k, key_w, value_w)

    # 1) small explicit tiles so the test exercises both the multi-tile T path
    #    (prev-row token shift) and the multi-block I accumulation
    fwd_small = jax.jit(functools.partial(rwkv7_feed_forward, tq=8, ti=128))
    # 2) auto (VMEM-budgeted) tiles
    fwd_auto = jax.jit(rwkv7_feed_forward)

    for fwd in (fwd_small, fwd_auto):
        out, state_out = fwd(x, state, ln_w, ln_b, x_k, wk_t, wv_t)
        jax.block_until_ready((out, state_out))
        assert out.shape == (B, T, H) and state_out.shape == (B, 1, H)
        # state_out is pure f32 LayerNorm -> tight tolerance
        assert jnp.allclose(state_out, ref_state_out, rtol=1e-4, atol=1e-4)
        # out goes through two bf16 MXU matmuls (f32 accumulation) -> loose tolerance
        assert jnp.allclose(out, ref_out, rtol=5e-2, atol=1e-1), (
            float(jnp.max(jnp.abs(out - ref_out))))

    print("KERNEL_OK")
</pallas_src>

<mosaic_0001>
module attributes {stable_mosaic.version = 11 : i64} {
  func.func @_ffn_kernel(%arg0: i32, %arg1: i32, %arg2: memref<8x128xf32, #tpu.memory_space<vmem>>, %arg3: memref<8x128xf32, #tpu.memory_space<vmem>>, %arg4: memref<1x128xf32, #tpu.memory_space<vmem>>, %arg5: memref<1x128xf32, #tpu.memory_space<vmem>>, %arg6: memref<1x128xf32, #tpu.memory_space<vmem>>, %arg7: memref<1x128xf32, #tpu.memory_space<vmem>>, %arg8: memref<128x128xbf16, #tpu.memory_space<vmem>>, %arg9: memref<128x128xbf16, #tpu.memory_space<vmem>>, %arg10: memref<8x128xf32, #tpu.memory_space<vmem>>, %arg11: memref<8x128xbf16, #tpu.memory_space<vmem>>, %arg12: memref<8x128xf32, #tpu.memory_space<vmem>>) attributes {dimension_semantics = [#tpu.dimension_semantics<parallel>, #tpu.dimension_semantics<arbitrary>], iteration_bounds = array<i64: 2, 2>, scalar_prefetch = 0 : i64, scratch_operands = 2 : i64, tpu.core_type = #tpu.core_type<tc>, window_params = [{transform_indices = @transform_0, window_bounds = array<i64: 8, 128>}, {transform_indices = @transform_1, window_bounds = array<i64: 8, 128>}, {pipeline_mode = #tpu.pipeline_mode<synchronous>, transform_indices = @transform_2, window_bounds = array<i64: 1, 128>}, {pipeline_mode = #tpu.pipeline_mode<synchronous>, transform_indices = @transform_3, window_bounds = array<i64: 1, 128>}, {pipeline_mode = #tpu.pipeline_mode<synchronous>, transform_indices = @transform_4, window_bounds = array<i64: 1, 128>}, {pipeline_mode = #tpu.pipeline_mode<synchronous>, transform_indices = @transform_5, window_bounds = array<i64: 1, 128>}, {transform_indices = @transform_6, window_bounds = array<i64: 128, 128>}, {transform_indices = @transform_7, window_bounds = array<i64: 128, 128>}, {transform_indices = @transform_8, window_bounds = array<i64: 8, 128>}]} {
    %c0_i32 = arith.constant 0 : i32
    %0 = arith.cmpi eq, %arg1, %c0_i32 : i32
    %1 = arith.extui %0 : i1 to i32
    %c0_i32_0 = arith.constant 0 : i32
    %2 = arith.cmpi ne, %1, %c0_i32_0 : i32
    scf.if %2 {
      %c0_13 = arith.constant 0 : index
      %c0_14 = arith.constant 0 : index
      %21 = vector.load %arg5[%c0_13, %c0_14] : memref<1x128xf32, #tpu.memory_space<vmem>>, vector<1x128xf32>
      %c0_15 = arith.constant 0 : index
      %c0_16 = arith.constant 0 : index
      %22 = vector.load %arg6[%c0_15, %c0_16] : memref<1x128xf32, #tpu.memory_space<vmem>>, vector<1x128xf32>
      %c0_17 = arith.constant 0 : index
      %c0_18 = arith.constant 0 : index
      %23 = vector.load %arg2[%c0_17, %c0_18] : memref<8x128xf32, #tpu.memory_space<vmem>>, vector<8x128xf32>
      %cst_19 = arith.constant dense<0.000000e+00> : vector<8xf32>
      %24 = vector.multi_reduction <add>, %23, %cst_19 [1] : vector<8x128xf32> to vector<8xf32>
      %25 = vector.shape_cast %24 : vector<8xf32> to vector<8x1xf32>
      %cst_20 = arith.constant 1.280000e+02 : f32
      %26 = vector.broadcast %cst_20 : f32 to vector<8x1xf32>
      %27 = arith.divf %25, %26 : vector<8x1xf32>
      %28 = vector.broadcast %27 : vector<8x1xf32> to vector<8x128xf32>
      %29 = arith.subf %23, %28 : vector<8x128xf32>
      %30 = arith.mulf %29, %29 : vector<8x128xf32>
      %cst_21 = arith.constant dense<0.000000e+00> : vector<8xf32>
      %31 = vector.multi_reduction <add>, %30, %cst_21 [1] : vector<8x128xf32> to vector<8xf32>
      %32 = vector.shape_cast %31 : vector<8xf32> to vector<8x1xf32>
      %cst_22 = arith.constant 1.280000e+02 : f32
      %33 = vector.broadcast %cst_22 : f32 to vector<8x1xf32>
      %34 = arith.divf %32, %33 : vector<8x1xf32>
      %cst_23 = arith.constant 9.99999974E-6 : f32
      %35 = vector.broadcast %cst_23 : f32 to vector<8x1xf32>
      %36 = arith.addf %34, %35 : vector<8x1xf32>
      %37 = math.rsqrt %36 : vector<8x1xf32>
      %38 = vector.broadcast %37 : vector<8x1xf32> to vector<8x128xf32>
      %39 = arith.mulf %29, %38 : vector<8x128xf32>
      %40 = vector.broadcast %21 : vector<1x128xf32> to vector<8x128xf32>
      %41 = arith.mulf %39, %40 : vector<8x128xf32>
      %42 = vector.broadcast %22 : vector<1x128xf32> to vector<8x128xf32>
      %43 = arith.addf %41, %42 : vector<8x128xf32>
      %c7 = arith.constant 7 : index
      %c0_24 = arith.constant 0 : index
      %44 = vector.load %arg3[%c7, %c0_24] : memref<8x128xf32, #tpu.memory_space<vmem>>, vector<1x128xf32>
      %cst_25 = arith.constant dense<0.000000e+00> : vector<1xf32>
      %45 = vector.multi_reduction <add>, %44, %cst_25 [1] : vector<1x128xf32> to vector<1xf32>
      %46 = vector.shape_cast %45 : vector<1xf32> to vector<1x1xf32>
      %cst_26 = arith.constant 1.280000e+02 : f32
      %47 = vector.broadcast %cst_26 : f32 to vector<1x1xf32>
      %48 = arith.divf %46, %47 : vector<1x1xf32>
      %49 = vector.broadcast %48 : vector<1x1xf32> to vector<1x128xf32>
      %50 = arith.subf %44, %49 : vector<1x128xf32>
      %51 = arith.mulf %50, %50 : vector<1x128xf32>
      %cst_27 = arith.constant dense<0.000000e+00> : vector<1xf32>
      %52 = vector.multi_reduction <add>, %51, %cst_27 [1] : vector<1x128xf32> to vector<1xf32>
      %53 = vector.shape_cast %52 : vector<1xf32> to vector<1x1xf32>
      %cst_28 = arith.constant 1.280000e+02 : f32
      %54 = vector.broadcast %cst_28 : f32 to vector<1x1xf32>
      %55 = arith.divf %53, %54 : vector<1x1xf32>
      %cst_29 = arith.constant 9.99999974E-6 : f32
      %56 = vector.broadcast %cst_29 : f32 to vector<1x1xf32>
      %57 = arith.addf %55, %56 : vector<1x1xf32>
      %58 = math.rsqrt %57 : vector<1x1xf32>
      %59 = vector.broadcast %58 : vector<1x1xf32> to vector<1x128xf32>
      %60 = arith.mulf %50, %59 : vector<1x128xf32>
      %61 = arith.mulf %60, %21 : vector<1x128xf32>
      %62 = arith.addf %61, %22 : vector<1x128xf32>
      %c0_i32_30 = arith.constant 0 : i32
      %63 = arith.cmpi eq, %arg0, %c0_i32_30 : i32
      %c0_31 = arith.constant 0 : index
      %c0_32 = arith.constant 0 : index
      %64 = vector.load %arg4[%c0_31, %c0_32] : memref<1x128xf32, #tpu.memory_space<vmem>>, vector<1x128xf32>
      %65 = arith.select %63, %64, %62 : vector<1x128xf32>
      %c1_i32_33 = arith.constant 1 : i32
      %66 = tpu.dynamic_rotate %43 by %c1_i32_33 dim 0 : vector<8x128xf32>, i32 -> vector<8x128xf32>
      %67 = tpu.iota {dimensions = array<i32: 0>} : vector<8x128xi32>
      %c0_i32_34 = arith.constant 0 : i32
      %68 = vector.broadcast %c0_i32_34 : i32 to vector<8x128xi32>
      %69 = arith.cmpi eq, %67, %68 : vector<8x128xi32>
      %70 = vector.shape_cast %65 : vector<1x128xf32> to vector<1x128xf32>
      %71 = vector.broadcast %70 : vector<1x128xf32> to vector<8x128xf32>
      %72 = arith.select %69, %71, %66 : vector<8x128xi1>, vector<8x128xf32>
      %73 = arith.subf %72, %43 : vector<8x128xf32>
      %c0_35 = arith.constant 0 : index
      %c0_36 = arith.constant 0 : index
      %74 = vector.load %arg7[%c0_35, %c0_36] : memref<1x128xf32, #tpu.memory_space<vmem>>, vector<1x128xf32>
      %75 = vector.broadcast %74 : vector<1x128xf32> to vector<8x128xf32>
      %76 = arith.mulf %73, %75 : vector<8x128xf32>
      %77 = arith.addf %43, %76 : vector<8x128xf32>
      %78 = arith.truncf %77 : vector<8x128xf32> to vector<8x128xbf16>
      %c0_37 = arith.constant 0 : index
      %c0_38 = arith.constant 0 : index
      %79 = vector.load %arg11[%c0_37, %c0_38] : memref<8x128xbf16, #tpu.memory_space<vmem>>, vector<8x128xbf16>
      tpu.vector_store %arg11[%c0_37, %c0_38], %78 {strides = array<i32>} : memref<8x128xbf16, #tpu.memory_space<vmem>>, vector<8x128xbf16>,
    } else {
    }
    %c0 = arith.constant 0 : index
    %c0_1 = arith.constant 0 : index
    %3 = vector.load %arg11[%c0, %c0_1] : memref<8x128xbf16, #tpu.memory_space<vmem>>, vector<8x128xbf16>
    %c0_2 = arith.constant 0 : index
    %c0_3 = arith.constant 0 : index
    %4 = vector.load %arg8[%c0_2, %c0_3] : memref<128x128xbf16, #tpu.memory_space<vmem>>, vector<128x128xbf16>
    %cst = arith.constant dense<0.000000e+00> : vector<8x128xf32>
    %5 = tpu.matmul %3, %4, %cst {dimension_numbers = #tpu.dot_dimension_numbers<[1], [0], [0], [1], [0, 0, 1, 1], [], []>} : vector<8x128xbf16>, vector<128x128xbf16>, vector<8x128xf32> -> vector<8x128xf32>
    %cst_4 = arith.constant 0.000000e+00 : f32
    %6 = vector.broadcast %cst_4 : f32 to vector<8x128xf32>
    %7 = arith.maximumf %5, %6 : vector<8x128xf32>
    %8 = arith.mulf %7, %7 : vector<8x128xf32>
    %9 = arith.truncf %8 : vector<8x128xf32> to vector<8x128xbf16>
    %c0_5 = arith.constant 0 : index
    %c0_6 = arith.constant 0 : index
    %10 = vector.load %arg9[%c0_5, %c0_6] : memref<128x128xbf16, #tpu.memory_space<vmem>>, vector<128x128xbf16>
    %cst_7 = arith.constant dense<0.000000e+00> : vector<8x128xf32>
    %11 = tpu.matmul %9, %10, %cst_7 {dimension_numbers = #tpu.dot_dimension_numbers<[1], [0], [0], [1], [0, 0, 1, 1], [], []>} : vector<8x128xbf16>, vector<128x128xbf16>, vector<8x128xf32> -> vector<8x128xf32>
    %c0_i32_8 = arith.constant 0 : i32
    %12 = arith.cmpi eq, %arg1, %c0_i32_8 : i32
    %13 = arith.extui %12 : i1 to i32
    %c0_i32_9 = arith.constant 0 : i32
    %14 = arith.cmpi ne, %13, %c0_i32_9 : i32
    scf.if %14 {
      %c0_13 = arith.constant 0 : index
      %c0_14 = arith.constant 0 : index
      %21 = vector.load %arg12[%c0_13, %c0_14] : memref<8x128xf32, #tpu.memory_space<vmem>>, vector<8x128xf32>
      tpu.vector_store %arg12[%c0_13, %c0_14], %11 {strides = array<i32>} : memref<8x128xf32, #tpu.memory_space<vmem>>, vector<8x128xf32>,
    } else {
    }
    %c0_i32_10 = arith.constant 0 : i32
    %15 = arith.cmpi sgt, %arg1, %c0_i32_10 : i32
    %16 = arith.extui %15 : i1 to i32
    %c0_i32_11 = arith.constant 0 : i32
    %17 = arith.cmpi ne, %16, %c0_i32_11 : i32
    scf.if %17 {
      %c0_13 = arith.constant 0 : index
      %c0_14 = arith.constant 0 : index
      %21 = vector.load %arg12[%c0_13, %c0_14] : memref<8x128xf32, #tpu.memory_space<vmem>>, vector<8x128xf32>
      %22 = arith.addf %21, %11 : vector<8x128xf32>
      %c0_15 = arith.constant 0 : index
      %c0_16 = arith.constant 0 : index
      %23 = vector.load %arg12[%c0_15, %c0_16] : memref<8x128xf32, #tpu.memory_space<vmem>>, vector<8x128xf32>
      tpu.vector_store %arg12[%c0_15, %c0_16], %22 {strides = array<i32>} : memref<8x128xf32, #tpu.memory_space<vmem>>, vector<8x128xf32>,
    } else {
    }
    %c1_i32 = arith.constant 1 : i32
    %18 = arith.cmpi eq, %arg1, %c1_i32 : i32
    %19 = arith.extui %18 : i1 to i32
    %c0_i32_12 = arith.constant 0 : i32
    %20 = arith.cmpi ne, %19, %c0_i32_12 : i32
    scf.if %20 {
      %c0_13 = arith.constant 0 : index
      %c0_14 = arith.constant 0 : index
      %21 = vector.load %arg12[%c0_13, %c0_14] : memref<8x128xf32, #tpu.memory_space<vmem>>, vector<8x128xf32>
      %c0_15 = arith.constant 0 : index
      %c0_16 = arith.constant 0 : index
      %22 = vector.load %arg2[%c0_15, %c0_16] : memref<8x128xf32, #tpu.memory_space<vmem>>, vector<8x128xf32>
      %23 = arith.addf %21, %22 : vector<8x128xf32>
      %c0_17 = arith.constant 0 : index
      %c0_18 = arith.constant 0 : index
      %24 = vector.load %arg10[%c0_17, %c0_18] : memref<8x128xf32, #tpu.memory_space<vmem>>, vector<8x128xf32>
      tpu.vector_store %arg10[%c0_17, %c0_18], %23 {strides = array<i32>} : memref<8x128xf32, #tpu.memory_space<vmem>>, vector<8x128xf32>,
    } else {
    }
    return
  }
  func.func @transform_0(%arg0: i32, %arg1: i32) -> (i32, i32) {
    %c0_i32 = arith.constant 0 : i32
    %c0_i32_0 = arith.constant 0 : i32
    return %arg0, %c0_i32 : i32, i32
  }
  func.func @transform_1(%arg0: i32, %arg1: i32) -> (i32, i32) {
    %c1_i32 = arith.constant 1 : i32
    %0 = arith.subi %arg0, %c1_i32 : i32
    %c0_i32 = arith.constant 0 : i32
    %1 = arith.maxsi %0, %c0_i32 : i32
    %c0_i32_0 = arith.constant 0 : i32
    %c0_i32_1 = arith.constant 0 : i32
    return %1, %c0_i32_0 : i32, i32
  }
  func.func @transform_2(%arg0: i32, %arg1: i32) -> (i32, i32) {
    %c0_i32 = arith.constant 0 : i32
    %c0_i32_0 = arith.constant 0 : i32
    %c0_i32_1 = arith.constant 0 : i32
    return %c0_i32, %c0_i32_0 : i32, i32
  }
  func.func @transform_3(%arg0: i32, %arg1: i32) -> (i32, i32) {
    %c0_i32 = arith.constant 0 : i32
    %c0_i32_0 = arith.constant 0 : i32
    %c0_i32_1 = arith.constant 0 : i32
    return %c0_i32, %c0_i32_0 : i32, i32
  }
  func.func @transform_4(%arg0: i32, %arg1: i32) -> (i32, i32) {
    %c0_i32 = arith.constant 0 : i32
    %c0_i32_0 = arith.constant 0 : i32
    %c0_i32_1 = arith.constant 0 : i32
    return %c0_i32, %c0_i32_0 : i32, i32
  }
  func.func @transform_5(%arg0: i32, %arg1: i32) -> (i32, i32) {
    %c0_i32 = arith.constant 0 : i32
    %c0_i32_0 = arith.constant 0 : i32
    %c0_i32_1 = arith.constant 0 : i32
    return %c0_i32, %c0_i32_0 : i32, i32
  }
  func.func @transform_6(%arg0: i32, %arg1: i32) -> (i32, i32) {
    %c0_i32 = arith.constant 0 : i32
    %c0_i32_0 = arith.constant 0 : i32
    return %c0_i32, %arg1 : i32, i32
  }
  func.func @transform_7(%arg0: i32, %arg1: i32) -> (i32, i32) {
    %c0_i32 = arith.constant 0 : i32
    %c0_i32_0 = arith.constant 0 : i32
    return %arg1, %c0_i32 : i32, i32
  }
  func.func @transform_8(%arg0: i32, %arg1: i32) -> (i32, i32) {
    %c0_i32 = arith.constant 0 : i32
    %c0_i32_0 = arith.constant 0 : i32
    return %arg0, %c0_i32 : i32, i32
  }
}

</mosaic_0001>

<bundles_post_ra>
// kernel: rwkv7_feed_forward.1
= control target key start
LH: loop header
LB: loop body
LE: loop exit
PB: predicated region body
PF: predicated region fallthrough
CT: control target
= control target key end

     0   :  { %s1576_s0 = inlined_call_operand.vmem [shape: f32[16,128], index: 0, kind: input, shape index: {}, may-alias: {0,1}]   ;;  %s1577_s1 = inlined_call_operand.vmem [shape: f32[16,128], index: 1, kind: input, shape index: {}, may-alias: {0,1}]   ;;  %s1578_s2 = inlined_call_operand.vmem [shape: f32[1,128], index: 2, kind: input, shape index: {}]   ;;  %s1579_s3 = inlined_call_operand.vmem [shape: f32[1,128], index: 3, kind: input, shape index: {}]   ;;  %s1580_s4 = inlined_call_operand.vmem [shape: f32[1,128], index: 4, kind: input, shape index: {}]   ;;  %s1581_s5 = inlined_call_operand.vmem [shape: f32[1,128], index: 5, kind: input, shape index: {}]   ;;  %s1582_s6 = inlined_call_operand.hbm [shape: bf16[128,256], index: 6, kind: input, shape index: {}]   ;;  %s1583_s7 = inlined_call_operand.hbm [shape: bf16[256,128], index: 7, kind: input, shape index: {}]   ;;  %s1584_s8 = inlined_call_operand.hbm [shape: f32[16,128], index: 8, kind: output, shape index: {}]  }
   0x1   :  { %1595 = sst [smem:[#allocation23_spill]] %s1581_s5 }
   0x2   :  { %1596 = sst [smem:[#allocation24_spill]] %s1582_s6 }
   0x3   :  { %1597 = sst [smem:[#allocation25_spill]] %s1584_s8 }
   0x4   :  { %13 = vsyncpa [#allocation5], 0 }
   0x5   :  { %15 = vsyncpa [#allocation5 + $0x1], 0 }
   0x6   :  { %16 = vsyncpa [#allocation8], 0 }
   0x7   :  { %18 = vsyncpa [#allocation8 + $0x1], 0 }
   0x8   :  { %19 = vsyncpa [#allocation6], 0 }
   0x9   :  { %21 = vsyncpa [#allocation6 + $0x1], 0  ;;  %s1318_s27 = smov 0   ;;  %s1320_s28 = smov 0  }
   0xa   :  { %s1322_s29 = smov 0   ;;  %s1324_s30 = smov 0  }
   0xb   :  { %s1326_s9 = smov 0   ;;  %s1328_s10 = smov 0  }
   0xc   :  { %s1330_s11 = smov 0   ;;  %s1332_s12 = smov 0  }
   0xd   :  { %s1334_s13 = smov 0   ;;  %s1336_s14 = smov 0  }
   0xe   :  { %s1338_s15 = smov 0  }
   0xf LB: > { %1598 = sst [smem:[#allocation13_spill]] %s1227_s27  ;;  %s847_s16 = sadd.s32 4294967295, %s1267_s15   ;;  %s1267_s15 = sphi %s1338_s15, %s27_s15   ;;  %s1263_s14 = sphi %s1336_s14, %s1626_s14   ;;  %s1259_s13 = sphi %s1334_s13, %s1632_s13   ;;  %s1255_s12 = sphi %s1332_s12, %s1624_s12   ;;  %s1251_s11 = sphi %s1330_s11, %s1631_s11   ;;  %s1247_s10 = sphi %s1328_s10, %s1623_s10   ;;  %s1243_s9 = sphi %s1326_s9, %s1630_s9   ;;  %s1239_s30 = sphi %s1324_s30, %s1629_s30   ;;  %s1235_s29 = sphi %s1322_s29, %s1621_s29   ;;  %s1231_s28 = sphi %s1320_s28, %s1628_s28   ;;  %s1227_s27 = sphi %s1318_s27, %s1627_s27  }
  0x10   : > { %1599 = sst [smem:[#allocation14_spill]] %s1235_s29  ;;  %s848_s17 = sadd.s32 4294967294, %s1267_s15  }
  0x11   : > { %1600 = sst [smem:[#allocation15_spill]] %s1247_s10  ;;  %s36_s18 = sadd.s32 1, %s1259_s13 }
  0x12   : > { %1601 = sst [smem:[#allocation16_spill]] %s1263_s14  ;;  %s39_s19 = sadd.s32 1, %s1263_s14 }
  0x13   : > { %p37_p0 = scmp.ge.s32.totalorder %s36_s18, 2  ;;  %s188_s20 = sadd.s32 1, %s1247_s10 }
  0x14   : > { %p195_p1 = scmp.ne.s32.totalorder %s1247_s10, %s1243_s9  ;;  %p196_p2 = scmp.eq.s32.totalorder %s1267_s15, 0 }
  0x15   : > { %s1634_s18 = smov (%p37_p0, %s36_s18), 0  ;;  %s1636_s19 = smov (!%p37_p0, %s39_s19), %s1263_s14 }
  0x16   : > { %1602 = sst [smem:[#allocation17_spill]] %s1634_s18  ;;  %s185_s21 = ssub.s32 %s1259_s13, %s1634_s18 }
  0x17   : > { %p1384_p3 = por %p196_p2, %p195_p1  ;;  %p41_p4 = scmp.ge.s32.totalorder %s1636_s19, 2 }
  0x18   : > { %p186_p5 = scmp.eq.s32.totalorder %s185_s21, 0  ;;  %p201_p6 = scmp.ne.s32.totalorder %s1243_s9, %s1239_s30 }
  0x19   : > { %p202_p7 = scmp.eq.s32.totalorder %s847_s16, 0  ;;  %s1638_s19 = smov (%p41_p4, %s1636_s19), 0 }
  0x1a   : > { %1604 = sst [smem:[#allocation18_spill]] %s1638_s19  ;;  %s237_s25 = ssub.s32 %s1263_s14, %s1638_s19 }
  0x1b   : > { %s1392_s23 = scalar_select %p186_p5, %s1247_s10, %s188_s20  }
  0x1c   : > { %p1394_p8 = por %p202_p7, %p201_p6  ;;  %p238_p9 = scmp.eq.s32.totalorder %s237_s25, 0 }
  0x1d   : > { %1605 = sst [smem:[#allocation19_spill]] %s1392_s23  ;;  %s240_s26 = sadd.s32 1, %s1235_s29 }
  0x1e   : > { %p250_p10 = scmp.ne.s32.totalorder %s1235_s29, %s1231_s28  ;;  %p251_p11 = scmp.eq.s32.totalorder %s847_s16, 3 }
  0x1f   : > { %s1404_s21 = scalar_select %p238_p9, %s1235_s29, %s240_s26  }
  0x20   : > { %p1406_p12 = por %p251_p11, %p250_p10  ;;  %p256_p13 = scmp.ne.s32.totalorder %s1231_s28, %s1227_s27 }
  0x21   : > { %1607 = sst [smem:[#allocation20_spill]] %s1404_s21  ;;  %p257_p0 = scmp.eq.s32.totalorder %s848_s17, 3 }
  0x22   : > { %s1608_s30 = scalar_select %p1406_p12, 1, 0 }
  0x23   : > { %p978_p1 = scmp.lt.s32.totalorder %s1267_s15, 4  ;;  %s1414_s20 = sand.u32 1, %s1247_s10  }
  0x24   : > { %1609 = sst [smem:[#allocation21_spill]] %s1608_s30  ;;  %p1416_p2 = por %p257_p0, %p256_p13 }
  0x25   : > { %s853_s16 = sshll.u32 %s1414_s20, 6  ;;  %s854_s26 = sshll.u32 %s1259_s13, 2 }
  0x26   : > { %s1610_s25 = scalar_select %p1416_p2, 1, 0 }
  0x27   : > { %s1612_s6 = sld [smem:[#allocation24_spill]]  ;;  %s313_s21 = scalar_lea.vmem [#allocation4], %s853_s16 }
  0x28   : > { %1611 = sst [smem:[#allocation22_spill]] %s1610_s25  ;;  %s320_s17 = sshll.u32 %s313_s21, 4  ;;  %s321_s17 = int_to_ptr.vmem [resolvable:$true] %s320_s17 }
  0x29   : > { %p1427_p4 = pnand %p978_p1, %p1384_p3  ;;  %p858_p5 = scmp.ge.s32.totalorder %s1267_s15, 1 }
  0x2a   : > { %s310_s29 = scalar_lea.sflag [#allocation5], %s1414_s20  ;;  %s1269_s25 = smov 128  }
  0x2b   : > { %s1270_s27 = smov 64   ;;  %s1271_s8 = smov 4  }
  0x2c   : > { %p350_p6 = scmp.lt.s32.totalorder %s1267_s15, 5  ;;  %s331_s30 = scalar_lea.sflag [#allocation8], %s1414_s20 }
  0x2d   : > { %s317_s14 = scalar_lea.hbm %s1612_s6, %s854_s26  ;;  %s334_s26 = scalar_lea.vmem [#allocation7], %s853_s16 }
  0x2e   : > { %s318_s23 = sshll.u32 %s317_s14, 4  ;;  %s942_s14 = sshll.u32 %s1259_s13, 6  ;;  %s319_s23 = int_to_ptr.hbm [resolvable:$true] %s318_s23 }
  0x2f   : > { %970 = dma.hbm_to_vmem [thread:$0]  (!%p1427_p4), %s319_s23, 1024, %s321_s17, %s310_s29, %s1269_s25, %s1270_s27, %s1271_s8  }
  0x30   : > { %p351_p7 = pnand %p858_p5, %p350_p6  ;;  %s339_s22 = scalar_lea.hbm %s1583_s7, %s942_s14 }
  0x31   : > { %s340_s21 = sshll.u32 %s339_s22, 4  ;;  %s342_s6 = sshll.u32 %s334_s26, 4  ;;  %s341_s21 = int_to_ptr.hbm [resolvable:$true] %s340_s21  ;;  %s343_s6 = int_to_ptr.vmem [resolvable:$true] %s342_s6 }
  0x32   : > { %973 = dma.hbm_to_vmem [thread:$0]  (!%p1427_p4), %s341_s21, 1024, %s343_s6, %s331_s30, %s1270_s27, %s1270_s27, %s1271_s8  }
  0x33   : > { %354 = sbr.rel (%p351_p7) target bundleno = 704 (0x2c0), region = 52  ;;  %s356_s5 = sand.u32 (!%p351_p7), 1, %s1243_s9  }
  0x34   : > { %s859_s29 = sshll.u32 (!%p351_p7), %s356_s5, 6  ;;  %s357_s23 = scalar_lea.sflag (!%p351_p7), [#allocation5], %s356_s5 }
  0x35   : > { %s1444_s25 = scalar_lea.vmem (!%p351_p7), [#allocation4], %s859_s29 }
  0x38   : > { %1214 = dma.done.wait (%p1394_p8), %s357_s23, 1024  }
  0x39   : > { %1216 = vsyncadd (%p1394_p8), %s357_s23, 4294966272  ;;  %s367_s16 = scalar_lea.sflag [#allocation8], %s356_s5  ;;  %s1450_s17 = scalar_lea.vmem [#allocation7], %s859_s29 }
  0x3a   : > { %1218 = dma.done.wait (%p1394_p8), %s367_s16, 1024  }
  0x3b   : > { %1220 = vsyncadd (%p1394_p8), %s367_s16, 4294966272  ;;  %s417_s6 = sand.u32 1, %s1231_s28   ;;  %p420_p3 = scmp.lt.s32.totalorder %s1255_s12, 1 }
  0x3c   : > { %s1460_s8 = sshll.u32 %s417_s6, 3  ;;  %s863_s27 = sadd.s32 4294967295, %s1255_s12 }
  0x3d   : > { %p425_p9 = scmp.gt.s32.totalorder %s863_s27, 0  ;;  %p864_p10 = scmp.lt.s32.totalorder %s863_s27, 1 }
  0x3e   : > { %s421_s5 = scalar_select %p420_p3, %s1255_s12, 1 }
  0x3f   : > { %s426_s10 = scalar_select %p425_p9, %s863_s27, 0 }
  0x40   : > { %s862_s30 = sshll.u32 %s421_s5, 3  ;;  %s419_s26 = scalar_lea.vmem [#allocation9], %s1460_s8 }
  0x41   : > { %s1467_s14 = scalar_lea.vmem %s1576_s0, %s862_s30  ;;  %s1640_s10 = smov (!%p864_p10, %s426_s10), 1 }
  0x42   : > { %s869_s18 = sshll.u32 %s1640_s10, 3  ;;  %p870_p8 = scmp.ne.s32.totalorder %s1251_s11, 0 }
  0x43   : > { %s430_s21 = scalar_lea.vmem %s1577_s1, %s869_s18  ;;  %p503_p11 = scmp.eq.s32.totalorder (!%p870_p8), %s1255_s12, 0 }
  0x44   : > { %438 = sbr.rel (%p870_p8) target bundleno = 362 (0x16a), region = 64  ;;  %s1614_s29 = sld [smem:[#allocation23_spill]] (!%p870_p8) }
  0x49   : > { %v477_v0 = vld [vmem:[%s430_s21 + $0x7] sm:$0x1]  ;;  %vm478_vm0 = vcmask 1040384   ;;  %v1272_v3 = vmov 128.0   ;;  %v439_v35 = vld [vmem:[%s1579_s3] sm:$0x1]  ;;  %v510_v42 = vlaneseq }
  0x4a   : > { %v479_v1 = vsel %vm478_vm0, %v477_v0, 0.0  ;;  %v441_v2 = vld [vmem:[%s1467_s14] sm:$0xff]  ;;  %1075 = vrcp.f32 %v1272_v3  ;;  %s505_s16 = scalar_select %p503_p11, 1, 0 }
  0x4b   : > { %480 = vadd.xlane.f32.xlu0 %v479_v1  ;;  %v440_v40 = vld [vmem:[%s1580_s4] sm:$0x1]  ;;  %v511_v50 = vshrl.u32 %v510_v42, 7 }
  0x4c   : > { %v506_v41 = vstv %s505_s16  ;;  %v1073_v44 = vld [vmem:[%s1579_s3] ss:$0 sm:$0xff] }
  0x4d   : > { %v504_v47 = vld [vmem:[%s1578_s2] sm:$0x1]  ;;  %vm507_vm8 = vcmp.eq.s32.totalorder %v506_v41, 1  ;;  %vm512_vm9 = vcmp.eq.s32.totalorder %v511_v50, 0 }
  0x4e   : > { %v1074_v49 = vld [vmem:[%s1580_s4] ss:$0 sm:$0xff] }
  0x4f   : > { %v1072_v56 = vld [vmem:[%s1614_s29] ss:$0 sm:$0xff] }
  0x50   : > { %v1076_v4 = vpop.eup %1075 }
  0x51   : > { %v445_v5 = vmul.f32 128.0, %v1076_v4  ;;  %vm449_vm1 = vweird.f32 %v1076_v4 }
  0x53   : > { %442 = vadd.xlane.f32.xlu0 %v441_v2  ;;  %v446_v6 = vsub.f32 1.0, %v445_v5 }
  0x55   : > { %v447_v7 = vmul.f32 %v1076_v4, %v446_v6 }
  0x57   : > { %v448_v8 = vadd.f32 %v1076_v4, %v447_v7 }
  0x59   : > { %v450_v9 = vsel %vm449_vm1, %v1076_v4, %v448_v8 }
  0xbe   : > { %v481_v10 = vpop.xlane.xlu0 %480 }
  0xbf   : > { %v482_v11 = vmul.f32 %v481_v10, %v450_v9 }
  0xc1   : > { %v483_v12 = vsub.f32 %v477_v0, %v482_v11 }
  0xc3   : > { %v484_v13 = vmul.f32 %v483_v12, %v483_v12 }
  0xc5   : > { %v485_v14 = vsel %vm478_vm0, %v484_v13, 0.0 }
  0xc6   : > { %486 = vadd.xlane.f32.xlu1 %v485_v14  ;;  %v443_v15 = vpop.xlane.xlu0 %442 }
  0xc7   : > { %v451_v16 = vmul.f32 %v450_v9, %v443_v15 }
  0xc9   : > { %v452_v17 = vsub.f32 %v441_v2, %v451_v16 }
  0xcb   : > { %v453_v18 = vmul.f32 %v452_v17, %v452_v17 }
  0xce   : > { %454 = vadd.xlane.f32.xlu1 %v453_v18 }
 0x139   : > { %v487_v19 = vpop.xlane.xlu1 %486 }
 0x13a   : > { %v488_v20 = vmul.f32 %v487_v19, %v450_v9 }
 0x13c   : > { %v489_v21 = vadd.f32 1e-05, %v488_v20 }
 0x13e   : > { %1077 = vrsqrt.f32 %v489_v21  ;;  %vm496_vm3 = vweird.f32 %v489_v21 }
 0x141   : > { %v455_v22 = vpop.xlane.xlu1 %454 }
 0x142   : > { %v456_v23 = vmul.f32 %v455_v22, %v450_v9 }
 0x144   : > { %v1078_v24 = vpop.eup %1077  ;;  %v457_v25 = vadd.f32 1e-05, %v456_v23 }
 0x145   : > { %v491_v26 = vmul.f32 %v1078_v24, %v489_v21  ;;  %vm497_vm2 = vweird.f32 %v1078_v24 }
 0x146   : > { %1079 = vrsqrt.f32 %v457_v25  ;;  %vm498_vm4 = vmor %vm496_vm3, %vm497_vm2  ;;  %vm464_vm6 = vweird.f32 %v457_v25 }
 0x147   : > { %v492_v27 = vmul.f32 %v1078_v24, %v491_v26 }
 0x149   : > { %v493_v28 = vmul.f32 0.5, %v492_v27 }
 0x14b   : > { %v494_v29 = vsub.f32 1.5, %v493_v28 }
 0x14c   : > { %v1080_v30 = vpop.eup %1079 }
 0x14d   : > { %v495_v31 = vmul.f32 %v1078_v24, %v494_v29  ;;  %v459_v32 = vmul.f32 %v1080_v30, %v457_v25  ;;  %vm465_vm5 = vweird.f32 %v1080_v30 }
 0x14e   : > { %vm466_vm7 = vmor %vm464_vm6, %vm465_vm5 }
 0x14f   : > { %v499_v33 = vsel %vm498_vm4, %v1078_v24, %v495_v31  ;;  %v460_v34 = vmul.f32 %v1080_v30, %v459_v32 }
 0x150   : > { %v500_v36 = vmul.f32 %v499_v33, %v483_v12 }
 0x151   : > { %v461_v37 = vmul.f32 0.5, %v460_v34 }
 0x152   : > { %v501_v38 = vmul.f32 %v500_v36, %v439_v35 }
 0x153   : > { %v462_v39 = vsub.f32 1.5, %v461_v37 }
 0x154   : > { %v502_v45 = vadd.f32 %v501_v38, %v440_v40 }
 0x155   : > { %v463_v43 = vmul.f32 %v1080_v30, %v462_v39 }
 0x156   : > { %v508_v52 = vsel %vm507_vm8, %v504_v47, %v502_v45 }
 0x157   : > { %v467_v46 = vsel %vm466_vm7, %v1080_v30, %v463_v43  ;;  %v514_v54 = vperm.slane %v508_v52, 0 }
 0x158   : > { %v468_v48 = vmul.f32 %v467_v46, %v452_v17 }
 0x15a   : > { %v472_v51 = vmul.f32 %v1073_v44, %v468_v48 }
 0x15c   : > { %v476_v53 = vadd.f32 %v1074_v49, %v472_v51 }
 0x15e   : > { %v509_v55 = vrot.slane %v476_v53, 7 }
 0x160   : > { %v516_v57 = vsel %vm512_vm9, %v514_v54, %v509_v55 }
 0x161   : > { %v517_v58 = vsub.f32 %v516_v57, %v476_v53 }
 0x163   : > { %v522_v59 = vmul.f32 %v1072_v56, %v517_v58 }
 0x165   : > { %v523_v60 = vadd.f32 %v522_v59, %v476_v53 }
 0x167   : > { %v524_v61 = vpack.c.bf16 %v523_v60, %v523_v60 }
 0x169   : > { %525 = vst [vmem:[#allocation2] sm:$0xf] %v524_v61 }
 0x16a PF: > { %v952_v62 = vld [vmem:[%s1444_s25 + $0x38] sm:$0xff]  ;;  %v951_v63 = vld [vmem:[%s1444_s25 + $0x30] sm:$0xff]  ;;  %v950_v2 = vld [vmem:[%s1444_s25 + $0x28] sm:$0xff] }
 0x16b   : > { %591 = vmatpush.bf16.msra.mxu0 %v952_v62  ;;  %v960_v0 = vld [vmem:[%s1450_s17 + $0x38] sm:$0xff]  ;;  %v959_v1 = vld [vmem:[%s1450_s17 + $0x30] sm:$0xff]  ;;  %v958_v3 = vld [vmem:[%s1450_s17 + $0x28] sm:$0xff] }
 0x16c   : > { %671 = vmatpush.bf16.msra.mxu1 %v960_v0  ;;  %v949_v4 = vld [vmem:[%s1444_s25 + $0x20] sm:$0xff]  ;;  %v948_v6 = vld [vmem:[%s1444_s25 + $0x18] sm:$0xff]  ;;  %v947_v8 = vld [vmem:[%s1444_s25 + $0x10] sm:$0xff] }
 0x16d   : > { %v957_v5 = vld [vmem:[%s1450_s17 + $0x20] sm:$0xff]  ;;  %v956_v7 = vld [vmem:[%s1450_s17 + $0x18] sm:$0xff]  ;;  %v955_v9 = vld [vmem:[%s1450_s17 + $0x10] sm:$0xff] }
 0x16e   : > { %v946_v10 = vld [vmem:[%s1444_s25 + $0x8] sm:$0xff]  ;;  %v945_v11 = vld [vmem:[%s1444_s25] sm:$0xff] }
 0x16f   : > { %592 = vmatpush.bf16.msra.mxu0 %v951_v63  ;;  %v954_v13 = vld [vmem:[%s1450_s17 + $0x8] sm:$0xff]  ;;  %v953_v14 = vld [vmem:[%s1450_s17] sm:$0xff] }
 0x170   : > { %672 = vmatpush.bf16.msra.mxu1 %v959_v1  ;;  %v526_v12 = vld [vmem:[#allocation2] sm:$0xf] }
 0x173   : > { %593 = vmatpush.bf16.msra.mxu0 %v950_v2 }
 0x174   : > { %673 = vmatpush.bf16.msra.mxu1 %v958_v3 }
 0x177   : > { %594 = vmatpush.bf16.msra.mxu0 %v949_v4 }
 0x178   : > { %674 = vmatpush.bf16.msra.mxu1 %v957_v5 }
 0x17b   : > { %595 = vmatpush.bf16.msra.mxu0 %v948_v6 }
 0x17c   : > { %675 = vmatpush.bf16.msra.mxu1 %v956_v7 }
 0x17f   : > { %596 = vmatpush.bf16.msra.mxu0 %v947_v8 }
 0x180   : > { %676 = vmatpush.bf16.msra.mxu1 %v955_v9 }
 0x183   : > { %597 = vmatpush.bf16.msra.mxu0 %v946_v10 }
 0x184   : > { %677 = vmatpush.bf16.msra.mxu1 %v954_v13 }
 0x187   : > { %598 = vmatpush.bf16.msra.mxu0 %v945_v11 }
 0x188   : > { %678 = vmatpush.bf16.msra.mxu1 %v953_v14 }
 0x18a   : > { %599 = vmatmul.bf16.vlgmr.msra.gmra.mxu0 %v526_v12 }
 0x207   : > { %v600_v15 = vpop.f32.mrf.mxu0 }
 0x208   : > { %v604_v16 = vmax.f32 %v600_v15, 0.0 }
 0x20a   : > { %v605_v17 = vmul.f32 %v604_v16, %v604_v16 }
 0x20c   : > { %v606_v18 = vpack.c.bf16 %v605_v17, %v605_v17 }
 0x20e   : > { %679 = vmatmul.bf16.vlgmr.msra.gmra.mxu1 %v606_v18 }
 0x20f   : > { %v602_v19 = vpop.f32.mrf.mxu0 }
 0x28b   : > { %v680_v20 = vpop.f32.mrf.mxu1 }
 0x28f   : > { %686 = sbr.rel (%p870_p8) target bundleno = 661 (0x295), region = 68 }
 0x293   : > { %v682_v21 = vpop.f32.mrf.mxu1 }
 0x294   : > { %687 = vst [vmem:[#allocation3] sm:$0xff] %v680_v20 }
 0x295 PF: > { %p936_p13 = scmp.le.s32.totalorder %s1251_s11, 0 }
 0x297   : > { %691 = sbr.rel (%p936_p13) target bundleno = 672 (0x2a0), region = 72 }
 0x29c   : > { %v692_v22 = vld [vmem:[#allocation3] sm:$0xff] }
 0x29d   : > { %v693_v23 = vadd.f32 %v692_v22, %v680_v20 }
 0x29f   : > { %694 = vst [vmem:[#allocation3] sm:$0xff] %v693_v23 }
 0x2a0 PF: > { %p937_p0 = scmp.ne.s32.totalorder %s1251_s11, 1 }
 0x2a2   : > { %698 = sbr.rel (%p937_p0) target bundleno = 684 (0x2ac), region = 76 }
 0x2a7   : > { %v699_v24 = vld [vmem:[#allocation3] sm:$0xff] }
 0x2a8   : > { %v700_v25 = vld [vmem:[%s1467_s14] sm:$0xff] }
 0x2a9   : > { %v701_v26 = vadd.f32 %v700_v25, %v699_v24 }
 0x2ab   : > { %702 = vst [vmem:[%s419_s26] sm:$0xff] %v701_v26 }
 0x2ac PF: > { %s939_s17 = sshll.u32 %s1255_s12, 3  ;;  %s1616_s27 = sld [smem:[#allocation25_spill]] }
 0x2ad   : > { %s716_s11 = sshll.u32 %s419_s26, 4  ;;  %s704_s14 = scalar_lea.sflag [#allocation6], %s417_s6  ;;  %s717_s11 = int_to_ptr.vmem [resolvable:$true] %s716_s11 }
 0x2b2   : > { %s1617_s5 = smov %s1616_s27  ;;  %s714_s10 = scalar_lea.hbm %s1616_s27, %s939_s17 }
 0x2b3   : > { %s718_s30 = sshll.u32 %s714_s10, 4  ;;  %s1161_s19 = scalar_lea.hbm %s1617_s5, 16  ;;  %s719_s30 = int_to_ptr.hbm [resolvable:$true] %s718_s30 }
 0x2b4   : > { %s1155_s20 = sshra.s32 %s719_s30, 4  ;;  %s1156_s20 = int_to_ptr.hbm [resolvable:$true] %s1155_s20 }
 0x2b5   : > { %s1157_s24 = scalar_lea.hbm %s1156_s20, 8  ;;  %p1162_p6 = scmp.lt.s32.totalorder %s1156_s20, %s1617_s5 }
 0x2b6   : > { %p1158_p1 = scmp.ne.s32.totalorder %s1156_s20, %s1157_s24  ;;  %p1163_p7 = scmp.lt.s32.totalorder %s1161_s19, %s1157_s24 }
 0x2b8   : > { %p1159_p4 = pnand %p1158_p1, %p1406_p12  ;;  %p1164_p3 = por %p1163_p7, %p1162_p6 }
 0x2ba   : > { %p1160_p5 = pneg %p1159_p4 }
 0x2bc   : > { %p1165_p9 = pnand %p1164_p3, %p1160_p5 }
 0x2be   : > { %1168 = shalt.err (!%p1165_p9)
}
 0x2bf   : > { %965 = dma.vmem_to_hbm [thread:$0]  (%p1406_p12), %s717_s11, 128, %s719_s30, %s704_s14  }
 0x2c0 PF: > { %s1618_s6 = sld [smem:[#allocation13_spill]]  ;;  %p979_p10 = scmp.ge.s32.totalorder %s1267_s15, 2 }
 0x2c2   : > { %p975_p8 = pnand %p979_p10, %p1416_p2 }
 0x2c4   : > { %p976_p11 = pneg %p975_p8 }
 0x2c6   : > { %s730_s26 = sand.u32 1, %s1618_s6  }
 0x2c7   : > { %s731_s29 = scalar_lea.sflag [#allocation6], %s730_s26 }
 0x2c8   : > { %1222 = dma.done.wait (%p976_p11), %s731_s29, 128  }
 0x2c9   : > { %1224 = vsyncadd (%p976_p11), %s731_s29, 4294967168  ;;  %s27_s15 = sadd.s32 1, %s1267_s15   ;;  %s1620_s17 = sld [smem:[#allocation14_spill]] }
 0x2ca   : > { %p24_p13 = scmp.ge.s32.totalorder %s27_s15, 6   ;;  %s1621_s29 = sld [smem:[#allocation20_spill]] }
 0x2cb   : > { %s1622_s25 = sld [smem:[#allocation15_spill]]  ;;  %s1627_s27 = smov %s1231_s28 }
 0x2cc   : > { %s1623_s10 = sld [smem:[#allocation19_spill]]  ;;  %s1629_s30 = smov %s1243_s9 }
 0x2cd   : > { %s1624_s12 = sld [smem:[#allocation16_spill]]  ;;  %s1631_s11 = smov %s1259_s13 }
 0x2ce   : > { %s1625_s23 = sld [smem:[#allocation17_spill]] }
 0x2cf   : > { %s1626_s14 = sld [smem:[#allocation18_spill]]  ;;  %s1628_s28 = smov %s1620_s17 }
 0x2d0   :  { %26 = sbr.rel (!%p24_p13) target bundleno = 15 (0xf), region = 132 }
 0x2d1   : > { %s1630_s9 = smov %s1622_s25 }
 0x2d4   : > { %s1632_s13 = smov %s1625_s23 }
 0x2d5   :  { %737 = vsyncpa [#allocation5], 1 }
 0x2d6   :  { %739 = vsyncpa [#allocation5 + $0x1], 1 }
 0x2d7   :  { %740 = vsyncpa [#allocation8], 1 }
 0x2d8   :  { %742 = vsyncpa [#allocation8 + $0x1], 1 }
 0x2d9   :  { %743 = vsyncpa [#allocation6], 1 }
 0x2da   :  { %745 = vsyncpa [#allocation6 + $0x1], 1 }

</bundles_post_ra>
